<compile_context>
chip_gen: v6e
topology: v6e:2x2x1
jax: 0.10.0
libtpu: 0.0.40
codegen_flags: <defaults>
</compile_context>

<pallas_src>
import jax
import jax.numpy as jnp
from jax.experimental import pallas as pl
from jax.experimental.pallas import tpu as pltpu


def _copy_kernel(x_ref, o_ref):
    # Hot path: whole-tile VMEM load + store (elementwise identity).
    o_ref[...] = x_ref[...]


_LANE_WIDTH = 1024            # lane-dense slab width (multiple of 128)
_TARGET_TILE_BYTES = 4 << 20  # ~4 MiB tile -> 2 in + 2 out buffers ~= 16 MiB
_VMEM_LIMIT_BYTES = 32 << 20  # fits v5e/v6e (128 MiB phys) and v7x (64 MiB phys)


def base_model_forward(x: jax.Array) -> jax.Array:
    """Identity forward pass of BaseModel, run through a Pallas TPU kernel.

    Accepts any-shape tensor (NCHW in practice); returns a tensor identical
    to x, streamed HBM->VMEM->HBM as a lane-dense 2-D slab.
    """
    orig_shape = x.shape
    dtype = x.dtype
    itemsize = jnp.dtype(dtype).itemsize
    # Packed sublane count: 8 for 32-bit, 16 for bf16, 32 for int8/fp8.
    sublane_pack = 8 * max(1, 4 // itemsize)

    total = int(x.size)
    if total == 0:
        return x

    # Flatten to a 1-D element stream, then view as a lane-dense 2-D slab.
    flat = x.reshape(-1)
    tail = (-total) % _LANE_WIDTH
    if tail:  # uncommon: tiny tail pad only
        flat = jnp.pad(flat, (0, tail))
    padded_total = total + tail
    rows = padded_total // _LANE_WIDTH

    max_tile_rows = max(sublane_pack, _TARGET_TILE_BYTES // (_LANE_WIDTH * itemsize))

    if rows <= max_tile_rows:
        # Single block covering the full array (always a legal block shape).
        tile_rows = rows
        grid_rows = 1
        padded_rows = rows
    else:
        # Balance rows across grid steps, round the block up to the packed
        # sublane tile; residual row padding is < grid * sublane_pack rows.
        grid_rows = pl.cdiv(rows, max_tile_rows)
        tile_rows = pl.cdiv(rows, grid_rows)
        tile_rows += (-tile_rows) % sublane_pack
        padded_rows = tile_rows * grid_rows

    x2d = flat.reshape(rows, _LANE_WIDTH)
    if padded_rows != rows:
        x2d = jnp.pad(x2d, ((0, padded_rows - rows), (0, 0)))

    out2d = pl.pallas_call(
        _copy_kernel,
        out_shape=jax.ShapeDtypeStruct((padded_rows, _LANE_WIDTH), dtype),
        grid_spec=pltpu.PrefetchScalarGridSpec(
            num_scalar_prefetch=0,
            grid=(grid_rows,),
            in_specs=[pl.BlockSpec((tile_rows, _LANE_WIDTH), lambda i: (i, 0))],
            out_specs=pl.BlockSpec((tile_rows, _LANE_WIDTH), lambda i: (i, 0)),
        ),
        compiler_params=pltpu.CompilerParams(
            # Only matters on v7x (2 TCs/chip); near-zero cost elsewhere.
            dimension_semantics=("parallel",),
            vmem_limit_bytes=_VMEM_LIMIT_BYTES,
        ),
        cost_estimate=pl.CostEstimate(
            flops=0, transcendentals=0, bytes_accessed=2 * total * itemsize),
    )(x2d)

    out_flat = out2d.reshape(-1)
    if padded_rows * _LANE_WIDTH != total:  # only when padding happened
        out_flat = out_flat[:total]
    return out_flat.reshape(orig_shape)


class BaseModelJax:
    """JAX/Pallas mirror of the PyTorch BaseModel."""

    def __init__(self, config):
        self.config = config
        self.params = {}  # BaseModel registers no trainable parameters.

    def forward(self, x):
        # The PyTorch base class raises NotImplementedError; we provide the
        # identity pass-through kernel as the concrete (no-op) compute.
        return base_model_forward(x)

    def summary(self):
        n_params = sum(int(jnp.size(p)) for p in self.params.values())
        print(f"Trainable parameters: {n_params}")


if __name__ == "__main__":
    key = jax.random.PRNGKey(0)
    # Small NCHW input consistent with an event-camera image model.
    x = jax.random.normal(key, (2, 4, 16, 16), dtype=jnp.float32)

    model = BaseModelJax(config={})
    y = model.forward(x)
    jax.block_until_ready(y)

    assert y.shape == x.shape and y.dtype == x.dtype
    assert bool(jnp.allclose(y, x)), "identity kernel mismatch"

    print("KERNEL_OK")
</pallas_src>

<mosaic_0001>
module attributes {stable_mosaic.version = 11 : i64} {
  func.func @_copy_kernel(%arg0: i32, %arg1: memref<2x1024xf32, #tpu.memory_space<vmem>>, %arg2: memref<2x1024xf32, #tpu.memory_space<vmem>>) attributes {dimension_semantics = [#tpu.dimension_semantics<parallel>], iteration_bounds = array<i64: 1>, scalar_prefetch = 0 : i64, scratch_operands = 0 : i64, tpu.core_type = #tpu.core_type<tc>, window_params = [{transform_indices = @transform_0, window_bounds = array<i64: 2, 1024>}, {transform_indices = @transform_1, window_bounds = array<i64: 2, 1024>}]} {
    %c0 = arith.constant 0 : index
    %c0_0 = arith.constant 0 : index
    %0 = vector.load %arg1[%c0, %c0_0] : memref<2x1024xf32, #tpu.memory_space<vmem>>, vector<2x1024xf32>
    %c0_1 = arith.constant 0 : index
    %c0_2 = arith.constant 0 : index
    %1 = vector.load %arg2[%c0_1, %c0_2] : memref<2x1024xf32, #tpu.memory_space<vmem>>, vector<2x1024xf32>
    tpu.vector_store %arg2[%c0_1, %c0_2], %0 {strides = array<i32>} : memref<2x1024xf32, #tpu.memory_space<vmem>>, vector<2x1024xf32>,
    return
  }
  func.func @transform_0(%arg0: i32) -> (i32, i32) {
    %c0_i32 = arith.constant 0 : i32
    %c0_i32_0 = arith.constant 0 : i32
    return %arg0, %c0_i32 : i32, i32
  }
  func.func @transform_1(%arg0: i32) -> (i32, i32) {
    %c0_i32 = arith.constant 0 : i32
    %c0_i32_0 = arith.constant 0 : i32
    return %arg0, %c0_i32 : i32, i32
  }
}

</mosaic_0001>

<bundles_post_ra>
// kernel: tpu_custom_call.1
= control target key start
LH: loop header
LB: loop body
LE: loop exit
PB: predicated region body
PF: predicated region fallthrough
CT: control target
= control target key end

     0   :  { %6 = vsyncpa [#allocation3], 0  ;;  %s104_s0 = inlined_call_operand.hbm [shape: f32[2,1024], index: 0, kind: input, shape index: {}]   ;;  %s105_s1 = inlined_call_operand.hbm [shape: f32[2,1024], index: 1, kind: output, shape index: {}]  }
   0x1   :  { %7 = vsyncpa [#allocation4], 0  ;;  %s86_s6 = smov [#allocation2]  }
   0x2   :  { %s14_s7 = sshll.u32 %s86_s6, 4  ;;  %s15_s7 = int_to_ptr.vmem [resolvable:$true] %s14_s7 }
   0x3   :  { %s50_s8 = scalar_lea.vmem %s15_s7, 256  ;;  %p55_p1 = scmp.lt.s32.totalorder %s15_s7, %s15_s7 }
   0x4   :  { %p51_p0 = scmp.ne.s32.totalorder %s15_s7, %s50_s8  ;;  %p56_p2 = scmp.lt.s32.totalorder %s50_s8, %s50_s8 }
   0x6   :  { %p57_p3 = por %p56_p2, %p55_p1 }
   0x8   :  { %p58_p4 = pnand %p57_p3, %p51_p0 }
   0xa   :  { %61 = shalt.err (!%p58_p4)
}
   0xb   :  { %17 = dma.hbm_to_vmem [thread:$0]  %s104_s0, 256, %s15_s7, [#allocation3]  }
   0xc   :  { %82 = dma.done.wait [#allocation3], 256  }
   0xd   :  { %83 = vsyncadd [#allocation3], 4294967040  ;;  %s87_s11 = smov [#allocation5]   ;;  %v21_v0 = vld [vmem:[#allocation2] sm:$0xff]  ;;  %v22_v1 = vld [vmem:[#allocation2 + $0x8] sm:$0xff] }
   0xe   :  { %s31_s12 = sshll.u32 %s87_s11, 4  ;;  %23 = vst [vmem:[#allocation5] sm:$0xff] %v21_v0  ;;  %24 = vst [vmem:[#allocation5 + $0x8] sm:$0xff] %v22_v1  ;;  %s32_s12 = int_to_ptr.vmem [resolvable:$true] %s31_s12 }
   0xf   :  { %s62_s13 = scalar_lea.vmem %s32_s12, 256  ;;  %p67_p6 = scmp.lt.s32.totalorder %s32_s12, %s32_s12 }
  0x10   :  { %p63_p5 = scmp.ne.s32.totalorder %s32_s12, %s62_s13  ;;  %p68_p7 = scmp.lt.s32.totalorder %s62_s13, %s62_s13 }
  0x12   :  { %p69_p8 = por %p68_p7, %p67_p6 }
  0x14   :  { %p70_p9 = pnand %p69_p8, %p63_p5 }
  0x16   :  { %73 = shalt.err (!%p70_p9)
}
  0x17   :  { %34 = dma.vmem_to_hbm [thread:$0]  %s32_s12, 256, %s105_s1, [#allocation4]  }
  0x18   :  { %84 = dma.done.wait [#allocation4], 256  }
  0x19   :  { %85 = vsyncadd [#allocation4], 4294967040 }
  0x1a   :  { %38 = vsyncpa [#allocation3], 1 }
  0x1b   :  { %39 = vsyncpa [#allocation4], 1 }

</bundles_post_ra>
